<compile_context>
chip_gen: v6e
topology: v6e:2x2x1
jax: 0.10.0
libtpu: 0.0.40
codegen_flags: <defaults>
</compile_context>

<pallas_src>
import functools
import math

import jax
import jax.numpy as jnp
from jax.experimental import pallas as pl
from jax.experimental.pallas import tpu as pltpu

# ----- module hyper-parameters (from the PyTorch script) -----
D_IN = 3
D_OUT = 2
NUM_HEADS = 2
HEAD_DIM = D_OUT // NUM_HEADS      # == 1
CONTEXT_LENGTH = 6                 # num_tokens of the example batch
DROPOUT = 0.0                      # identity at inference

# The kernel below exploits head_dim == 1 (per-head scores are rank-1 outer
# products on the VPU). For head_dim > 1 the score would become a small sum
# of outer products over the head features.
assert HEAD_DIM == 1, "kernel is specialized to head_dim == 1 (d_out == num_heads)"


def _mha_kernel(x_ref, wqkv_ref, wo_ref, bo_ref, o_ref, *, batch, seq):
    """Single invocation: processes the whole (batch*seq) problem at once.

    x_ref:    (B*T, d_in)      flattened input tokens
    wqkv_ref: (d_in, 3*d_out)  fused [W_query | W_key | W_value] (pre-transposed)
    wo_ref:   (d_out, d_out)   out_proj weight (pre-transposed)
    bo_ref:   (1, d_out)       out_proj bias
    o_ref:    (B*T, d_out)     output
    """
    B, T = batch, seq
    scale = 1.0 / math.sqrt(HEAD_DIM)

    # ---- fused QKV projection: ONE MXU matmul for the whole batch ----
    x = x_ref[...].astype(jnp.float32)                                # (B*T, d_in)
    qkv = jnp.dot(x, wqkv_ref[...],
                  preferred_element_type=jnp.float32)                 # (B*T, 3*d_out)

    # ---- causal mask built in-kernel (no HBM mask input / DMA) ----
    row = jax.lax.broadcasted_iota(jnp.int32, (T, T), 0)              # query pos t
    col = jax.lax.broadcasted_iota(jnp.int32, (T, T), 1)              # key pos s
    masked = col > row                                                # (T, T) bool
    neg = jnp.float32(-1e30)     # large finite: robust even for fully-masked rows

    # ---- per-(batch, head) causal attention, statically unrolled ----
    # head_dim == 1 => column h of q/k/v is head h, and each head's score
    # matrix is the rank-1 outer product q_col * k_row: pure VPU broadcasting,
    # no K=1 MXU matmuls, no grid steps.
    ctx_rows = []
    for b in range(B):                                 # trace-time unroll (B=2)
        lo = b * T
        q_b = qkv[lo:lo + T, 0:D_OUT] * scale                         # (T, H), scale folded into q
        # k and v heads as rows (key axis on lanes): one small transpose/batch.
        kv_t = qkv[lo:lo + T, D_OUT:3 * D_OUT].T                      # (2H, T): rows 0..H-1 = k, H..2H-1 = v

        head_cols = []
        for h in range(NUM_HEADS):                     # trace-time unroll (H=2)
            q_col = q_b[:, h:h + 1]                                   # (T, 1)
            k_row = kv_t[h:h + 1, :]                                  # (1, T)
            v_row = kv_t[NUM_HEADS + h:NUM_HEADS + h + 1, :]          # (1, T)

            scores = q_col * k_row                                    # (T, T) outer product (VPU)
            scores = jnp.where(masked, neg, scores)                   # causal masked_fill

            # numerically-stable softmax over keys; reciprocal on the EUP.
            m = jnp.max(scores, axis=-1, keepdims=True)               # (T, 1)
            e = jnp.exp(scores - m)
            denom = jnp.sum(e, axis=-1, keepdims=True)                # (T, 1)
            w = e * pl.reciprocal(denom, approx=True)                 # (T, T)

            # context for this head: ctx[t] = sum_s w[t, s] * v[s]
            head_cols.append(jnp.sum(w * v_row, axis=-1, keepdims=True))   # (T, 1)

        ctx_rows.append(jnp.concatenate(head_cols, axis=-1))          # (T, d_out)

    ctx = jnp.concatenate(ctx_rows, axis=0)                           # (B*T, d_out)

    # ---- output projection (one matmul + bias) ----
    out = jnp.dot(ctx, wo_ref[...],
                  preferred_element_type=jnp.float32) + bo_ref[...]   # (B*T, d_out)
    o_ref[...] = out.astype(o_ref.dtype)


def multi_head_self_attention(x, wq, wk, wv, wo, bo):
    """x: (B, T, d_in); wq/wk/wv: (d_in, d_out) pre-transposed; wo: (d_out, d_out); bo: (1, d_out)."""
    B, T, d_in = x.shape
    # Fuse the three projection matrices into one operand and flatten the batch
    # into the sublane axis so the kernel does a single projection matmul.
    wqkv = jnp.concatenate([wq, wk, wv], axis=1)                      # (d_in, 3*d_out)
    x2 = x.reshape(B * T, d_in)                                       # (B*T, d_in)

    vmem = pl.BlockSpec(memory_space=pltpu.MemorySpace.VMEM)          # whole array resident in VMEM
    kernel = functools.partial(_mha_kernel, batch=B, seq=T)

    # No grid: a single invocation handles the entire batch (all operands are a
    # few KiB, so grid steps would be pure pipeline/DMA bookkeeping overhead).
    out = pl.pallas_call(
        kernel,
        out_shape=jax.ShapeDtypeStruct((B * T, D_OUT), jnp.float32),
        in_specs=[vmem, vmem, vmem, vmem],
        out_specs=vmem,
    )(x2, wqkv, wo, bo)
    return out.reshape(B, T, D_OUT)


def _reference(x, wq, wk, wv, wo, bo):
    """Pure-JAX reference mirroring the PyTorch forward exactly."""
    B, T, _ = x.shape
    q = x @ wq
    k = x @ wk
    v = x @ wv
    q = q.reshape(B, T, NUM_HEADS, HEAD_DIM).transpose(0, 2, 1, 3)
    k = k.reshape(B, T, NUM_HEADS, HEAD_DIM).transpose(0, 2, 1, 3)
    v = v.reshape(B, T, NUM_HEADS, HEAD_DIM).transpose(0, 2, 1, 3)
    scores = jnp.einsum("bhtd,bhsd->bhts", q, k)
    mask = jnp.triu(jnp.ones((T, T), dtype=bool), k=1)
    scores = jnp.where(mask[None, None], -jnp.inf, scores)
    w = jax.nn.softmax(scores / math.sqrt(HEAD_DIM), axis=-1)
    ctx = jnp.einsum("bhts,bhsd->bhtd", w, v)
    ctx = ctx.transpose(0, 2, 1, 3).reshape(B, T, D_OUT)
    return ctx @ wo + bo


def _linear_init(key, fan_in, fan_out):
    """nn.Linear default init: U(-1/sqrt(fan_in), 1/sqrt(fan_in)).
    Returned already transposed to (fan_in, fan_out)."""
    bound = 1.0 / math.sqrt(fan_in)
    kw, kb = jax.random.split(key)
    w = jax.random.uniform(kw, (fan_in, fan_out), jnp.float32, -bound, bound)
    b = jax.random.uniform(kb, (1, fan_out), jnp.float32, -bound, bound)
    return w, b


if __name__ == "__main__":
    # Example input from the PyTorch script: 6 tokens, d_in=3, stacked twice.
    inputs = jnp.array(
        [[0.43, 0.15, 0.89],
         [0.55, 0.87, 0.66],
         [0.57, 0.85, 0.64],
         [0.22, 0.58, 0.33],
         [0.77, 0.25, 0.10],
         [0.05, 0.80, 0.55]], dtype=jnp.float32)
    x = jnp.stack((inputs, inputs), axis=0)                           # (2, 6, 3)

    # Deterministic parameter init (qkv_bias=False -> no q/k/v biases).
    key = jax.random.PRNGKey(0)
    kq, kk, kv, ko = jax.random.split(key, 4)
    wq, _ = _linear_init(kq, D_IN, D_OUT)
    wk, _ = _linear_init(kk, D_IN, D_OUT)
    wv, _ = _linear_init(kv, D_IN, D_OUT)
    wo, bo = _linear_init(ko, D_OUT, D_OUT)

    out = jax.block_until_ready(multi_head_self_attention(x, wq, wk, wv, wo, bo))
    ref = _reference(x, wq, wk, wv, wo, bo)

    assert out.shape == (2, CONTEXT_LENGTH, D_OUT), out.shape
    # Tolerance accounts for the EUP approximate reciprocal in the softmax.
    assert jnp.allclose(out, ref, atol=5e-3, rtol=5e-3), (out, ref)

    print("KERNEL_OK")
</pallas_src>

<mosaic_0001>
module attributes {stable_mosaic.version = 11 : i64} {
  func.func @_mha_kernel(%arg0: memref<12x3xf32, #tpu.memory_space<vmem>>, %arg1: memref<3x6xf32, #tpu.memory_space<vmem>>, %arg2: memref<2x2xf32, #tpu.memory_space<vmem>>, %arg3: memref<1x2xf32, #tpu.memory_space<vmem>>, %arg4: memref<12x2xf32, #tpu.memory_space<vmem>>) attributes {dimension_semantics = [], scalar_prefetch = 0 : i64, scratch_operands = 0 : i64, tpu.core_type = #tpu.core_type<tc>} {
    %c0 = arith.constant 0 : index
    %c0_0 = arith.constant 0 : index
    %0 = vector.load %arg0[%c0, %c0_0] : memref<12x3xf32, #tpu.memory_space<vmem>>, vector<12x3xf32>
    %c0_1 = arith.constant 0 : index
    %c0_2 = arith.constant 0 : index
    %1 = vector.load %arg1[%c0_1, %c0_2] : memref<3x6xf32, #tpu.memory_space<vmem>>, vector<3x6xf32>
    %cst = arith.constant dense<0.000000e+00> : vector<12x6xf32>
    %2 = tpu.matmul %0, %1, %cst {dimension_numbers = #tpu.dot_dimension_numbers<[1], [0], [0], [1], [0, 0, 1, 1], [], []>} : vector<12x3xf32>, vector<3x6xf32>, vector<12x6xf32> -> vector<12x6xf32>
    %3 = tpu.iota {dimensions = array<i32: 0>} : vector<6x6xi32>
    %4 = tpu.iota {dimensions = array<i32: 1>} : vector<6x6xi32>
    %5 = arith.cmpi sgt, %4, %3 : vector<6x6xi32>
    %6 = vector.extract_strided_slice %2 {offsets = [0, 0], sizes = [6, 2], strides = [1, 1]} : vector<12x6xf32> to vector<6x2xf32>
    %cst_3 = arith.constant 1.000000e+00 : f32
    %7 = vector.broadcast %cst_3 : f32 to vector<6x2xf32>
    %8 = arith.mulf %6, %7 : vector<6x2xf32>
    %9 = vector.extract_strided_slice %2 {offsets = [0, 2], sizes = [6, 4], strides = [1, 1]} : vector<12x6xf32> to vector<6x4xf32>
    %10 = tpu.transpose %9, [1, 0] : vector<6x4xf32> -> vector<4x6xf32>
    %11 = vector.extract_strided_slice %8 {offsets = [0, 0], sizes = [6, 1], strides = [1, 1]} : vector<6x2xf32> to vector<6x1xf32>
    %12 = vector.extract_strided_slice %10 {offsets = [0, 0], sizes = [1, 6], strides = [1, 1]} : vector<4x6xf32> to vector<1x6xf32>
    %13 = vector.extract_strided_slice %10 {offsets = [2, 0], sizes = [1, 6], strides = [1, 1]} : vector<4x6xf32> to vector<1x6xf32>
    %14 = vector.broadcast %11 : vector<6x1xf32> to vector<6x6xf32>
    %15 = vector.broadcast %12 : vector<1x6xf32> to vector<6x6xf32>
    %16 = arith.mulf %14, %15 : vector<6x6xf32>
    %cst_4 = arith.constant -1.000000e+30 : f32
    %17 = vector.broadcast %cst_4 : f32 to vector<6x6xf32>
    %18 = arith.select %5, %17, %16 : vector<6x6xi1>, vector<6x6xf32>
    %cst_5 = arith.constant dense<0xFF800000> : vector<6xf32>
    %19 = vector.multi_reduction <maximumf>, %18, %cst_5 [1] : vector<6x6xf32> to vector<6xf32>
    %20 = vector.shape_cast %19 : vector<6xf32> to vector<6x1xf32>
    %21 = vector.broadcast %20 : vector<6x1xf32> to vector<6x6xf32>
    %22 = arith.subf %18, %21 : vector<6x6xf32>
    %23 = math.exp %22 : vector<6x6xf32>
    %cst_6 = arith.constant dense<0.000000e+00> : vector<6xf32>
    %24 = vector.multi_reduction <add>, %23, %cst_6 [1] : vector<6x6xf32> to vector<6xf32>
    %25 = vector.shape_cast %24 : vector<6xf32> to vector<6x1xf32>
    %26 = tpu.reciprocal %25 {approx = true} : vector<6x1xf32> -> vector<6x1xf32>
    %27 = vector.broadcast %26 : vector<6x1xf32> to vector<6x6xf32>
    %28 = arith.mulf %23, %27 : vector<6x6xf32>
    %29 = vector.broadcast %13 : vector<1x6xf32> to vector<6x6xf32>
    %30 = arith.mulf %28, %29 : vector<6x6xf32>
    %cst_7 = arith.constant dense<0.000000e+00> : vector<6xf32>
    %31 = vector.multi_reduction <add>, %30, %cst_7 [1] : vector<6x6xf32> to vector<6xf32>
    %32 = vector.shape_cast %31 : vector<6xf32> to vector<6x1xf32>
    %33 = vector.extract_strided_slice %8 {offsets = [0, 1], sizes = [6, 1], strides = [1, 1]} : vector<6x2xf32> to vector<6x1xf32>
    %34 = vector.extract_strided_slice %10 {offsets = [1, 0], sizes = [1, 6], strides = [1, 1]} : vector<4x6xf32> to vector<1x6xf32>
    %35 = vector.extract_strided_slice %10 {offsets = [3, 0], sizes = [1, 6], strides = [1, 1]} : vector<4x6xf32> to vector<1x6xf32>
    %36 = vector.broadcast %33 : vector<6x1xf32> to vector<6x6xf32>
    %37 = vector.broadcast %34 : vector<1x6xf32> to vector<6x6xf32>
    %38 = arith.mulf %36, %37 : vector<6x6xf32>
    %cst_8 = arith.constant -1.000000e+30 : f32
    %39 = vector.broadcast %cst_8 : f32 to vector<6x6xf32>
    %40 = arith.select %5, %39, %38 : vector<6x6xi1>, vector<6x6xf32>
    %cst_9 = arith.constant dense<0xFF800000> : vector<6xf32>
    %41 = vector.multi_reduction <maximumf>, %40, %cst_9 [1] : vector<6x6xf32> to vector<6xf32>
    %42 = vector.shape_cast %41 : vector<6xf32> to vector<6x1xf32>
    %43 = vector.broadcast %42 : vector<6x1xf32> to vector<6x6xf32>
    %44 = arith.subf %40, %43 : vector<6x6xf32>
    %45 = math.exp %44 : vector<6x6xf32>
    %cst_10 = arith.constant dense<0.000000e+00> : vector<6xf32>
    %46 = vector.multi_reduction <add>, %45, %cst_10 [1] : vector<6x6xf32> to vector<6xf32>
    %47 = vector.shape_cast %46 : vector<6xf32> to vector<6x1xf32>
    %48 = tpu.reciprocal %47 {approx = true} : vector<6x1xf32> -> vector<6x1xf32>
    %49 = vector.broadcast %48 : vector<6x1xf32> to vector<6x6xf32>
    %50 = arith.mulf %45, %49 : vector<6x6xf32>
    %51 = vector.broadcast %35 : vector<1x6xf32> to vector<6x6xf32>
    %52 = arith.mulf %50, %51 : vector<6x6xf32>
    %cst_11 = arith.constant dense<0.000000e+00> : vector<6xf32>
    %53 = vector.multi_reduction <add>, %52, %cst_11 [1] : vector<6x6xf32> to vector<6xf32>
    %54 = vector.shape_cast %53 : vector<6xf32> to vector<6x1xf32>
    %55 = tpu.concatenate %32, %54 in 1 : vector<6x1xf32>, vector<6x1xf32> -> vector<6x2xf32>
    %56 = vector.extract_strided_slice %2 {offsets = [6, 0], sizes = [6, 2], strides = [1, 1]} : vector<12x6xf32> to vector<6x2xf32>
    %cst_12 = arith.constant 1.000000e+00 : f32
    %57 = vector.broadcast %cst_12 : f32 to vector<6x2xf32>
    %58 = arith.mulf %56, %57 : vector<6x2xf32>
    %59 = vector.extract_strided_slice %2 {offsets = [6, 2], sizes = [6, 4], strides = [1, 1]} : vector<12x6xf32> to vector<6x4xf32>
    %60 = tpu.transpose %59, [1, 0] : vector<6x4xf32> -> vector<4x6xf32>
    %61 = vector.extract_strided_slice %58 {offsets = [0, 0], sizes = [6, 1], strides = [1, 1]} : vector<6x2xf32> to vector<6x1xf32>
    %62 = vector.extract_strided_slice %60 {offsets = [0, 0], sizes = [1, 6], strides = [1, 1]} : vector<4x6xf32> to vector<1x6xf32>
    %63 = vector.extract_strided_slice %60 {offsets = [2, 0], sizes = [1, 6], strides = [1, 1]} : vector<4x6xf32> to vector<1x6xf32>
    %64 = vector.broadcast %61 : vector<6x1xf32> to vector<6x6xf32>
    %65 = vector.broadcast %62 : vector<1x6xf32> to vector<6x6xf32>
    %66 = arith.mulf %64, %65 : vector<6x6xf32>
    %cst_13 = arith.constant -1.000000e+30 : f32
    %67 = vector.broadcast %cst_13 : f32 to vector<6x6xf32>
    %68 = arith.select %5, %67, %66 : vector<6x6xi1>, vector<6x6xf32>
    %cst_14 = arith.constant dense<0xFF800000> : vector<6xf32>
    %69 = vector.multi_reduction <maximumf>, %68, %cst_14 [1] : vector<6x6xf32> to vector<6xf32>
    %70 = vector.shape_cast %69 : vector<6xf32> to vector<6x1xf32>
    %71 = vector.broadcast %70 : vector<6x1xf32> to vector<6x6xf32>
    %72 = arith.subf %68, %71 : vector<6x6xf32>
    %73 = math.exp %72 : vector<6x6xf32>
    %cst_15 = arith.constant dense<0.000000e+00> : vector<6xf32>
    %74 = vector.multi_reduction <add>, %73, %cst_15 [1] : vector<6x6xf32> to vector<6xf32>
    %75 = vector.shape_cast %74 : vector<6xf32> to vector<6x1xf32>
    %76 = tpu.reciprocal %75 {approx = true} : vector<6x1xf32> -> vector<6x1xf32>
    %77 = vector.broadcast %76 : vector<6x1xf32> to vector<6x6xf32>
    %78 = arith.mulf %73, %77 : vector<6x6xf32>
    %79 = vector.broadcast %63 : vector<1x6xf32> to vector<6x6xf32>
    %80 = arith.mulf %78, %79 : vector<6x6xf32>
    %cst_16 = arith.constant dense<0.000000e+00> : vector<6xf32>
    %81 = vector.multi_reduction <add>, %80, %cst_16 [1] : vector<6x6xf32> to vector<6xf32>
    %82 = vector.shape_cast %81 : vector<6xf32> to vector<6x1xf32>
    %83 = vector.extract_strided_slice %58 {offsets = [0, 1], sizes = [6, 1], strides = [1, 1]} : vector<6x2xf32> to vector<6x1xf32>
    %84 = vector.extract_strided_slice %60 {offsets = [1, 0], sizes = [1, 6], strides = [1, 1]} : vector<4x6xf32> to vector<1x6xf32>
    %85 = vector.extract_strided_slice %60 {offsets = [3, 0], sizes = [1, 6], strides = [1, 1]} : vector<4x6xf32> to vector<1x6xf32>
    %86 = vector.broadcast %83 : vector<6x1xf32> to vector<6x6xf32>
    %87 = vector.broadcast %84 : vector<1x6xf32> to vector<6x6xf32>
    %88 = arith.mulf %86, %87 : vector<6x6xf32>
    %cst_17 = arith.constant -1.000000e+30 : f32
    %89 = vector.broadcast %cst_17 : f32 to vector<6x6xf32>
    %90 = arith.select %5, %89, %88 : vector<6x6xi1>, vector<6x6xf32>
    %cst_18 = arith.constant dense<0xFF800000> : vector<6xf32>
    %91 = vector.multi_reduction <maximumf>, %90, %cst_18 [1] : vector<6x6xf32> to vector<6xf32>
    %92 = vector.shape_cast %91 : vector<6xf32> to vector<6x1xf32>
    %93 = vector.broadcast %92 : vector<6x1xf32> to vector<6x6xf32>
    %94 = arith.subf %90, %93 : vector<6x6xf32>
    %95 = math.exp %94 : vector<6x6xf32>
    %cst_19 = arith.constant dense<0.000000e+00> : vector<6xf32>
    %96 = vector.multi_reduction <add>, %95, %cst_19 [1] : vector<6x6xf32> to vector<6xf32>
    %97 = vector.shape_cast %96 : vector<6xf32> to vector<6x1xf32>
    %98 = tpu.reciprocal %97 {approx = true} : vector<6x1xf32> -> vector<6x1xf32>
    %99 = vector.broadcast %98 : vector<6x1xf32> to vector<6x6xf32>
    %100 = arith.mulf %95, %99 : vector<6x6xf32>
    %101 = vector.broadcast %85 : vector<1x6xf32> to vector<6x6xf32>
    %102 = arith.mulf %100, %101 : vector<6x6xf32>
    %cst_20 = arith.constant dense<0.000000e+00> : vector<6xf32>
    %103 = vector.multi_reduction <add>, %102, %cst_20 [1] : vector<6x6xf32> to vector<6xf32>
    %104 = vector.shape_cast %103 : vector<6xf32> to vector<6x1xf32>
    %105 = tpu.concatenate %82, %104 in 1 : vector<6x1xf32>, vector<6x1xf32> -> vector<6x2xf32>
    %106 = tpu.concatenate %55, %105 in 0 : vector<6x2xf32>, vector<6x2xf32> -> vector<12x2xf32>
    %c0_21 = arith.constant 0 : index
    %c0_22 = arith.constant 0 : index
    %107 = vector.load %arg2[%c0_21, %c0_22] : memref<2x2xf32, #tpu.memory_space<vmem>>, vector<2x2xf32>
    %cst_23 = arith.constant dense<0.000000e+00> : vector<12x2xf32>
    %108 = tpu.matmul %106, %107, %cst_23 {dimension_numbers = #tpu.dot_dimension_numbers<[1], [0], [0], [1], [0, 0, 1, 1], [], []>} : vector<12x2xf32>, vector<2x2xf32>, vector<12x2xf32> -> vector<12x2xf32>
    %c0_24 = arith.constant 0 : index
    %c0_25 = arith.constant 0 : index
    %109 = vector.load %arg3[%c0_24, %c0_25] : memref<1x2xf32, #tpu.memory_space<vmem>>, vector<1x2xf32>
    %110 = vector.broadcast %109 : vector<1x2xf32> to vector<12x2xf32>
    %111 = arith.addf %108, %110 : vector<12x2xf32>
    %c0_26 = arith.constant 0 : index
    %c0_27 = arith.constant 0 : index
    %112 = vector.load %arg4[%c0_26, %c0_27] : memref<12x2xf32, #tpu.memory_space<vmem>>, vector<12x2xf32>
    tpu.vector_store %arg4[%c0_26, %c0_27], %111 {strides = array<i32>} : memref<12x2xf32, #tpu.memory_space<vmem>>, vector<12x2xf32>,
    return
  }
}

</mosaic_0001>

<bundles_post_ra>
// kernel: tpu_custom_call.1
= control target key start
LH: loop header
LB: loop body
LE: loop exit
PB: predicated region body
PF: predicated region fallthrough
CT: control target
= control target key end

     0   :  { %vm27_vm0 = vcmask 1042432   ;;  %vm20_vm1 = vcmask 23552   ;;  %v472_v3 = vmov 0   ;;  %vm209_vm2 = vcmask 1041408   ;;  %s565_s1 = inlined_call_operand.vmem [shape: f32[3,6], index: 1, kind: input, shape index: {}]   ;;  %s566_s0 = inlined_call_operand.vmem [shape: f32[12,3], index: 0, kind: input, shape index: {}]   ;;  %s567_s2 = inlined_call_operand.vmem [shape: f32[2,2], index: 2, kind: input, shape index: {}]   ;;  %s568_s3 = inlined_call_operand.vmem [shape: f32[1,2], index: 3, kind: input, shape index: {}]   ;;  %s569_s4 = inlined_call_operand.vmem [shape: f32[12,2], index: 4, kind: output, shape index: {}]  }
   0x1   :  { %v19_v0 = vld [vmem:[%s565_s1] sm:$0x7]  ;;  %v18_v2 = vld [vmem:[%s566_s0 + $0x8] sm:$0xf]  ;;  %452 = vset.pattern.permute.xlu1 %v472_v3  ;;  %454 = vset.pattern.permute.xlu0 %v472_v3  ;;  %s473_s1 = smov 126   ;;  %v474_v9 = vmov 1   ;;  %v106_v13 = vlaneseq }
   0x2   :  { %v17_v1 = vld [vmem:[%s566_s0] sm:$0xff]  ;;  %438 = vmatprep.subr.msk.mxu0 %vm27_vm0, %v19_v0  ;;  %vm157_vm4 = vcmask 46080   ;;  %vm206_vm5 = vcmask 7168   ;;  %vm324_vm6 = vcmask 1045504   ;;  %vm334_vm7 = vcmask 15360  }
   0x3   :  { %440 = vmatprep.mubr.msk.f32.mxu0 %vm20_vm1, %v17_v1  ;;  %439 = vmatpush3.msk.msra.mxu0 %vm27_vm0, %v19_v0  ;;  %v510_v15 = vshrl.u32 %v106_v13, 7  ;;  %v109_v21 = vand.u32 127, %v106_v13  ;;  %vm419_vm8 = vcmask 11264  }
   0x4   :  { %441 = vmatmul.mubr.msk.f32.vlgmr.msra.gmra.mxu0 %vm20_vm1, %v18_v2 }
   0x5   :  { %v153_v17 = vsub.s32 0, %v510_v15  ;;  %v183_v18 = vsub.s32 1, %v510_v15  ;;  %vm110_vm3 = vcmp.gt.s32.totalorder %v109_v21, %v510_v15 }
  0xc4   :  { %v442_v4 = vpop.f32.mrf.mxu0 }
  0xc5   :  { %v211_v6 = vrot.slane %v442_v4, 6 }
  0xc6   :  { %v97_v5 = vpop.f32.mrf.mxu0 }
  0xc7   :  { %v210_v7 = vrot.slane %v97_v5, 6  ;;  %148 = vperm.xlu1 %452, %v97_v5  }
  0xc9   :  { %v212_v8 = vsel %vm209_vm2, %v210_v7, %v211_v6  ;;  %v200_v7 = vsub.s32 3, %v510_v15 }
  0xca   :  { %213 = vrot.lane.b32.xlu0 %v212_v8, %s473_s1  ;;  %v171_v8 = vsub.s32 2, %v510_v15 }
  0xcb   :  { %453 = vset.pattern.permute.xlu1 %v474_v9 }
  0xcc   :  { %178 = vperm.xlu1 %453, %v97_v5  }
  0xce   :  { %112 = vrot.lane.b32.xlu0 %v97_v5, %s473_s1 }
  0xd0   :  { %285 = vperm.xlu1 %453, %v442_v4  }
  0xd2   :  { %249 = vperm.xlu0 %454, %v442_v4  }
 0x13c   :  { %v214_v10 = vpop.permute.xlu0 %213 }
 0x13d   :  { %216 = vxpose.xlu1.b32.start.end [1/1] (short) (narrow) %v214_v10, 8 }
 0x140   :  { %v113_v11 = vpop.permute.xlu0 %112 }
 0x141   :  { %115 = vxpose.xlu0.b32.start.end [1/1] (short) (narrow) %v113_v11, 8 }
 0x142   :  { %v149_v12 = vpop.permute.xlu1 %148 }
 0x147   :  { %v179_v14 = vpop.permute.xlu1 %178 }
 0x14b   :  { %v286_v16 = vpop.permute.xlu1 %285 }
 0x14d   :  { %v250_v19 = vpop.permute.xlu0 %249 }
 0x16a   :  { %455 = vset.pattern.permute.xlu0 %v474_v9 }
 0x1b9   :  { %v514_v20 = vpop.trf.xlu1 }
 0x1ba   :  { %v255_v22 = vrot.slane %v514_v20, %v153_v17  ;;  %v291_v23 = vrot.slane %v514_v20, %v183_v18 }
 0x1bc   :  { %v292_v24 = vmul.f32 %v291_v23, %v179_v14  ;;  %v293_v25 = vmul.f32 %v291_v23, %v286_v16  ;;  %v256_v26 = vmul.f32 %v255_v22, %v149_v12  ;;  %v257_v27 = vmul.f32 %v255_v22, %v250_v19 }
 0x1bd   :  { %v518_v28 = vpop.trf.xlu0 }
 0x1be   :  { %v296_v29 = vrot.slane %v292_v24, 6  ;;  %v297_v30 = vrot.slane %v293_v25, 6  ;;  %v260_v31 = vrot.slane %v256_v26, 6  ;;  %v261_v32 = vrot.slane %v257_v27, 6 }
 0x1bf   :  { %v184_v33 = vrot.slane %v518_v28, %v183_v18  ;;  %v154_v34 = vrot.slane %v518_v28, %v153_v17  ;;  %v201_v23 = vrot.slane %v518_v28, %v200_v7  ;;  %v172_v25 = vrot.slane %v518_v28, %v171_v8 }
 0x1c0   :  { %v298_v35 = vsel %vm209_vm2, %v296_v29, %v297_v30  ;;  %v262_v36 = vsel %vm209_vm2, %v260_v31, %v261_v32  ;;  %v326_v30 = vld [vmem:[%s567_s2] sm:$0x3] }
 0x1c1   :  { %v300_v37 = vsel %vm110_vm3, -1e+30, %v298_v35  ;;  %v264_v38 = vsel %vm110_vm3, -1e+30, %v262_v36  ;;  %v185_v39 = vmul.f32 %v184_v33, %v179_v14  ;;  %v155_v40 = vmul.f32 %v154_v34, %v149_v12  ;;  %443 = vmatprep.subr.msk.mxu1 %vm209_vm2, %v326_v30 }
 0x1c2   :  { %v301_v41 = vsel %vm157_vm4, %v300_v37, -inf  ;;  %v265_v42 = vsel %vm157_vm4, %v264_v38, -inf  ;;  %v315_v12 = vrot.slane %v514_v20, %v200_v7  ;;  %v279_v14 = vrot.slane %v514_v20, %v171_v8  ;;  %444 = vmatpush3.msk.msra.mxu1 %vm209_vm2, %v326_v30 }
 0x1c3   :  { %302 = vmax.xlane.f32.xlu1 %v301_v41  ;;  %266 = vmax.xlane.f32.xlu0 %v265_v42  ;;  %v186_v43 = vsel %vm110_vm3, -1e+30, %v185_v39  ;;  %v156_v44 = vsel %vm110_vm3, -1e+30, %v155_v40 }
 0x1c4   :  { %v187_v45 = vsel %vm157_vm4, %v186_v43, -inf  ;;  %v158_v46 = vsel %vm157_vm4, %v156_v44, -inf }
 0x1c7   :  { %188 = vmax.xlane.f32.xlu1 %v187_v45  ;;  %159 = vmax.xlane.f32.xlu0 %v158_v46 }
 0x24c   :  { %v303_v47 = vpop.xlane.xlu1 %302  ;;  %v267_v48 = vpop.xlane.xlu0 %266 }
 0x24d   :  { %v304_v49 = vsub.f32 %v300_v37, %v303_v47  ;;  %v268_v50 = vsub.f32 %v264_v38, %v267_v48  ;;  %v428_v38 = vld [vmem:[%s568_s3] ss:$0 sm:$0xff] }
 0x24f   :  { %v305_v51 = vmul.f32 1.442695, %v304_v49  ;;  %v269_v52 = vmul.f32 1.442695, %v268_v50 }
 0x250   :  { %v189_v53 = vpop.xlane.xlu1 %188  ;;  %v160_v54 = vpop.xlane.xlu0 %159 }
 0x251   :  { %456 = vpow2.f32 %v305_v51  ;;  %v190_v55 = vsub.f32 %v186_v43, %v189_v53  ;;  %v161_v56 = vsub.f32 %v156_v44, %v160_v54 }
 0x252   :  { %458 = vpow2.f32 %v269_v52 }
 0x253   :  { %v191_v57 = vmul.f32 1.442695, %v190_v55  ;;  %v162_v58 = vmul.f32 1.442695, %v161_v56 }
 0x255   :  { %460 = vpow2.f32 %v191_v57 }
 0x256   :  { %462 = vpow2.f32 %v162_v58 }
 0x25e   :  { %v457_v59 = vpop.eup %456 }
 0x25f   :  { %v459_v60 = vpop.eup %458  ;;  %v307_v61 = vsel %vm157_vm4, %v457_v59, 0.0 }
 0x260   :  { %308 = vadd.xlane.f32.xlu1 %v307_v61  ;;  %v271_v62 = vsel %vm157_vm4, %v459_v60, 0.0 }
 0x261   :  { %272 = vadd.xlane.f32.xlu0 %v271_v62 }
 0x262   :  { %v461_v63 = vpop.eup %460 }
 0x263   :  { %v463_v0 = vpop.eup %462  ;;  %v193_v1 = vsel %vm157_vm4, %v461_v63, 0.0 }
 0x264   :  { %194 = vadd.xlane.f32.xlu1 %v193_v1  ;;  %v164_v2 = vsel %vm157_vm4, %v463_v0, 0.0 }
 0x265   :  { %165 = vadd.xlane.f32.xlu0 %v164_v2 }
 0x2e9   :  { %v309_v3 = vpop.xlane.xlu1 %308 }
 0x2ea   :  { %464 = vrcp.f32 %v309_v3  ;;  %v273_v4 = vpop.xlane.xlu0 %272 }
 0x2eb   :  { %466 = vrcp.f32 %v273_v4 }
 0x2ed   :  { %v195_v5 = vpop.xlane.xlu1 %194 }
 0x2ee   :  { %468 = vrcp.f32 %v195_v5  ;;  %v166_v6 = vpop.xlane.xlu0 %165 }
 0x2ef   :  { %470 = vrcp.f32 %v166_v6 }
 0x2f7   :  { %v465_v9 = vpop.eup %464 }
 0x2f8   :  { %v467_v10 = vpop.eup %466  ;;  %v311_v11 = vmul.f32 %v465_v9, %v457_v59 }
 0x2f9   :  { %v275_v13 = vmul.f32 %v467_v10, %v459_v60 }
 0x2fa   :  { %v316_v16 = vmul.f32 %v315_v12, %v311_v11 }
 0x2fb   :  { %v469_v17 = vpop.eup %468  ;;  %v280_v18 = vmul.f32 %v279_v14, %v275_v13 }
 0x2fc   :  { %v471_v19 = vpop.eup %470  ;;  %v317_v21 = vsel %vm157_vm4, %v316_v16, 0.0  ;;  %v197_v22 = vmul.f32 %v469_v17, %v461_v63 }
 0x2fd   :  { %318 = vadd.xlane.f32.xlu1 %v317_v21  ;;  %v281_v15 = vsel %vm157_vm4, %v280_v18, 0.0  ;;  %v168_v24 = vmul.f32 %v471_v19, %v463_v0 }
 0x2fe   :  { %282 = vadd.xlane.f32.xlu0 %v281_v15  ;;  %v202_v26 = vmul.f32 %v201_v23, %v197_v22 }
 0x2ff   :  { %v173_v27 = vmul.f32 %v172_v25, %v168_v24 }
 0x300   :  { %v203_v20 = vsel %vm157_vm4, %v202_v26, 0.0 }
 0x301   :  { %204 = vadd.xlane.f32.xlu1 %v203_v20  ;;  %v174_v29 = vsel %vm157_vm4, %v173_v27, 0.0 }
 0x302   :  { %175 = vadd.xlane.f32.xlu0 %v174_v29 }
 0x386   :  { %v319_v31 = vpop.xlane.xlu1 %318 }
 0x387   :  { %v283_v28 = vpop.xlane.xlu0 %282 }
 0x388   :  { %v320_v32 = vsel %vm206_vm5, %v283_v28, %v319_v31 }
 0x389   :  { %v322_v34 = vrot.slane %v320_v32, 2 }
 0x38a   :  { %v205_v33 = vpop.xlane.xlu1 %204 }
 0x38b   :  { %v176_v35 = vpop.xlane.xlu0 %175 }
 0x38c   :  { %v207_v36 = vsel %vm206_vm5, %v176_v35, %v205_v33 }
 0x38d   :  { %v325_v37 = vsel %vm324_vm6, %v207_v36, %v322_v34 }
 0x38e   :  { %445 = vmatprep.mubr.msk.f32.mxu1 %vm334_vm7, %v325_v37 }
 0x38f   :  { %446 = vmatmul.mubr.msk.f32.vlgmr.msra.gmra.mxu1 %vm334_vm7, %v322_v34 }
 0x44f   :  { %v447_v39 = vpop.f32.mrf.mxu1 }
 0x450   :  { %v415_v40 = vadd.f32 %v447_v39, %v428_v38 }
 0x451   :  { %v409_v41 = vpop.f32.mrf.mxu1 }
 0x452   :  { %420 = vst.msk [vmem:[%s569_s4 + $0x8] sm:$0xf] %vm419_vm8, %v415_v40  ;;  %v410_v42 = vadd.f32 %v428_v38, %v409_v41 }
 0x454   :  { %418 = vst.msk [vmem:[%s569_s4] sm:$0xff] %vm334_vm7, %v410_v42 }

</bundles_post_ra>
